<compile_context>
chip_gen: v6e
topology: v6e:2x2x1
jax: 0.10.0
libtpu: 0.0.40
codegen_flags: <defaults>
</compile_context>

<pallas_src>
import functools

import numpy as np
import jax
import jax.numpy as jnp
from jax.experimental import pallas as pl
from jax.experimental.pallas import tpu as pltpu

# ---- Config (mirrors `cfg` used by the PyTorch module) ----
N_PREDICTIONS = 3     # cfg.n_predictions
N_PAST_LATENTS = 2    # cfg.n_past_latents
N_NEGATIVES = 6       # cfg.n_negatives
FEAT = 512            # feature dim hard-coded to 512 in the PyTorch forward
BATCH = 4             # batch_size


def _infonce_kernel(pred_ref, pos_ref, neg_ref, loss_ref, corr_ref,
                    *, n_neg, n_pred, batch):
    """All P prediction steps in one shot, never materializing the full candidate set.

    pred_ref : (P*B, F)       VMEM   latent predictions, one row per (step, batch)
    pos_ref  : (P*B, F)       VMEM   positive samples, same row ordering
    neg_ref  : (N*P*B, F)     VMEM   candidate-major negatives: rows c*P*B .. (c+1)*P*B
    loss_ref, corr_ref : (1, 1) SMEM scalar outputs (finished in-kernel)
    """
    pb = n_pred * batch

    pred = pred_ref[...]                                              # (P*B, F), ~6 vregs

    # positive score per (step, batch) group
    fk_pos = jnp.sum(jnp.exp(pred * pos_ref[...]),
                     axis=-1, keepdims=True)                          # (P*B, 1)

    # Loop over the N negative candidates; only tiny (P*B, 1) carries stay live.
    # Static trip count (N=6) and static row slices -> zero-cost ref views, no spills.
    sum_neg = jnp.zeros((pb, 1), jnp.float32)
    max_neg = jnp.zeros((pb, 1), jnp.float32)   # fk values are strictly positive
    for c in range(n_neg):
        neg_c = neg_ref[c * pb:(c + 1) * pb, :]                       # (P*B, F) static slice
        fk_c = jnp.sum(jnp.exp(pred * neg_c), axis=-1, keepdims=True) # (P*B, 1)
        sum_neg = sum_neg + fk_c
        max_neg = jnp.maximum(max_neg, fk_c)

    # per-(step,batch) term: log(fk_pos / (fk_pos + sum_neg)), factored for stability.
    terms = jnp.log(fk_pos) - jnp.log(fk_pos + sum_neg)               # (P*B, 1)
    loss_scale = np.float32(-1.0 / ((n_neg + 1) * n_pred * batch))
    loss_ref[0, 0] = loss_scale * jnp.sum(terms)

    # correct iff the positive strictly beats every negative of its group;
    # equivalent to beating the max negative. correct = total count / P.
    beats_all = (fk_pos > max_neg).astype(jnp.float32)                # (P*B, 1)
    corr_ref[0, 0] = jnp.sum(beats_all) * np.float32(1.0 / n_pred)


@jax.jit
def infonce_loss(preds, positives, negatives_flat):
    """preds, positives: (P, B, F); negatives_flat: (N*P*B, F) candidate-major.

    Returns (scalar loss, scalar correct_predictions) exactly as the PyTorch forward.
    """
    P, B, F = preds.shape
    PB = P * B
    N = negatives_flat.shape[0] // PB

    # Free views only — no device-side concat/transpose kernels.
    pred2 = preds.reshape(PB, F)
    pos2 = positives.reshape(PB, F)

    loss, correct = pl.pallas_call(
        functools.partial(_infonce_kernel, n_neg=N, n_pred=P, batch=B),
        out_shape=(
            jax.ShapeDtypeStruct((1, 1), jnp.float32),
            jax.ShapeDtypeStruct((1, 1), jnp.float32),
        ),
        in_specs=[
            pl.BlockSpec(memory_space=pltpu.MemorySpace.VMEM),
            pl.BlockSpec(memory_space=pltpu.MemorySpace.VMEM),
            pl.BlockSpec(memory_space=pltpu.MemorySpace.VMEM),
        ],
        out_specs=(
            pl.BlockSpec(memory_space=pltpu.MemorySpace.SMEM),
            pl.BlockSpec(memory_space=pltpu.MemorySpace.SMEM),
        ),
    )(pred2, pos2, negatives_flat)
    return loss[0, 0], correct[0, 0]


def sample_negatives(all_latents, n_negatives, batch_size, n_pred, rng):
    """Deterministic replacement for the `random.choice`-based negative sampling.

    all_latents: (n_all, B, F) ordered as k_past_present + k_future.
    Returns (n_pred, B, n_negatives, F) (matches the PyTorch layout).
    """
    # TODO(synk): the PyTorch `random.choice` negative sampling is inherently host-side
    # data assembly; it is reproduced deterministically in numpy and only the gathered
    # tensor is fed to the kernel.
    n_all, _, feat = all_latents.shape
    neg = np.zeros((n_pred, batch_size, n_negatives, feat), np.float32)
    for step in range(n_pred):
        for b in range(batch_size):
            other = [x for x in range(batch_size) if x != b]
            for j in range(n_negatives):
                t = rng.randint(0, n_all)                 # time index choice (any of k_all)
                bp = other[rng.randint(0, len(other))]    # batch index != b
                neg[step, b, j] = all_latents[t, bp]
    return neg


def negatives_to_candidate_major(neg_pbnf):
    """Host-side (numpy) relayout (P,B,N,F) -> (N*P*B, F), rows c*P*B..(c+1)*P*B = candidate c."""
    P, B, N, F = neg_pbnf.shape
    return np.ascontiguousarray(
        np.transpose(neg_pbnf, (2, 0, 1, 3)).reshape(N * P * B, F))


def infonce_reference(preds, positives, negatives):
    """Pure numpy reference (mirrors the PyTorch forward). negatives: (P, B, N, F)."""
    P, B, _ = preds.shape
    N = negatives.shape[2]
    loss = np.zeros(B, np.float32)
    correct = np.zeros(P)
    for step in range(P):
        fk_pos = np.sum(np.exp(preds[step] * positives[step]), axis=-1)                  # (B,)
        fk_neg = np.sum(np.exp(preds[step][:, None, :] * negatives[step]), axis=-1)      # (B, N)
        loss = loss + 1.0 / (N + 1) * np.log(fk_pos / (fk_pos + np.sum(fk_neg, axis=-1)))
        for b in range(B):
            correct[step] += float(np.all(fk_pos[b] > fk_neg[b]))
    loss = loss / P
    loss = -np.sum(loss) / B
    return float(loss), float(np.mean(correct))


if __name__ == "__main__":
    key = jax.random.PRNGKey(0)
    k1, k2, k3 = jax.random.split(key, 3)

    # latent_predictions for the future keys 'k+1'..'k+P' (only these are used in forward)
    preds = (jax.random.normal(k1, (N_PREDICTIONS, BATCH, FEAT), jnp.float32) * 0.3)
    # positive_samples for 'k+1'..'k+P'
    positives = (jax.random.normal(k2, (N_PREDICTIONS, BATCH, FEAT), jnp.float32) * 0.3)
    # past_latents for 'k-1'..'k-n_past', 'k'
    past_present = (jax.random.normal(k3, (N_PAST_LATENTS + 1, BATCH, FEAT), jnp.float32) * 0.3)

    all_latents = np.concatenate([np.asarray(past_present), np.asarray(positives)], axis=0)
    rng = np.random.RandomState(0)
    negatives_np = sample_negatives(all_latents, N_NEGATIVES, BATCH, N_PREDICTIONS, rng)

    # Build the candidate-major kernel layout on the host (free; no XLA relayout kernel).
    negatives_flat = jnp.asarray(negatives_to_candidate_major(negatives_np))

    loss, correct = infonce_loss(preds, positives, negatives_flat)
    loss = jax.block_until_ready(loss)
    correct = jax.block_until_ready(correct)

    ref_loss, ref_correct = infonce_reference(
        np.asarray(preds), np.asarray(positives), negatives_np)

    assert np.allclose(float(loss), ref_loss, rtol=1e-4, atol=1e-5), (float(loss), ref_loss)
    assert np.allclose(float(correct), ref_correct, rtol=1e-5, atol=1e-6), (float(correct), ref_correct)
    print("KERNEL_OK")
</pallas_src>

<mosaic_0001>
module attributes {stable_mosaic.version = 11 : i64} {
  func.func @_infonce_kernel(%arg0: memref<12x512xf32, #tpu.memory_space<vmem>>, %arg1: memref<12x512xf32, #tpu.memory_space<vmem>>, %arg2: memref<72x512xf32, #tpu.memory_space<vmem>>, %arg3: memref<1x1xf32, #tpu.memory_space<smem>>, %arg4: memref<1x1xf32, #tpu.memory_space<smem>>) attributes {dimension_semantics = [], scalar_prefetch = 0 : i64, scratch_operands = 0 : i64, tpu.core_type = #tpu.core_type<tc>} {
    %c0 = arith.constant 0 : index
    %c0_0 = arith.constant 0 : index
    %0 = vector.load %arg0[%c0, %c0_0] : memref<12x512xf32, #tpu.memory_space<vmem>>, vector<12x512xf32>
    %c0_1 = arith.constant 0 : index
    %c0_2 = arith.constant 0 : index
    %1 = vector.load %arg1[%c0_1, %c0_2] : memref<12x512xf32, #tpu.memory_space<vmem>>, vector<12x512xf32>
    %2 = arith.mulf %0, %1 : vector<12x512xf32>
    %3 = math.exp %2 : vector<12x512xf32>
    %cst = arith.constant dense<0.000000e+00> : vector<12xf32>
    %4 = vector.multi_reduction <add>, %3, %cst [1] : vector<12x512xf32> to vector<12xf32>
    %5 = vector.shape_cast %4 : vector<12xf32> to vector<12x1xf32>
    %cst_3 = arith.constant 0.000000e+00 : f32
    %6 = vector.broadcast %cst_3 : f32 to vector<12x1xf32>
    %cst_4 = arith.constant 0.000000e+00 : f32
    %7 = vector.broadcast %cst_4 : f32 to vector<12x1xf32>
    %c0_5 = arith.constant 0 : index
    %c0_6 = arith.constant 0 : index
    %8 = vector.load %arg2[%c0_5, %c0_6] : memref<72x512xf32, #tpu.memory_space<vmem>>, vector<12x512xf32>
    %9 = arith.mulf %0, %8 : vector<12x512xf32>
    %10 = math.exp %9 : vector<12x512xf32>
    %cst_7 = arith.constant dense<0.000000e+00> : vector<12xf32>
    %11 = vector.multi_reduction <add>, %10, %cst_7 [1] : vector<12x512xf32> to vector<12xf32>
    %12 = vector.shape_cast %11 : vector<12xf32> to vector<12x1xf32>
    %13 = arith.addf %6, %12 : vector<12x1xf32>
    %14 = arith.maximumf %7, %12 : vector<12x1xf32>
    %c12 = arith.constant 12 : index
    %c0_8 = arith.constant 0 : index
    %15 = vector.load %arg2[%c12, %c0_8] : memref<72x512xf32, #tpu.memory_space<vmem>>, vector<12x512xf32>
    %16 = arith.mulf %0, %15 : vector<12x512xf32>
    %17 = math.exp %16 : vector<12x512xf32>
    %cst_9 = arith.constant dense<0.000000e+00> : vector<12xf32>
    %18 = vector.multi_reduction <add>, %17, %cst_9 [1] : vector<12x512xf32> to vector<12xf32>
    %19 = vector.shape_cast %18 : vector<12xf32> to vector<12x1xf32>
    %20 = arith.addf %13, %19 : vector<12x1xf32>
    %21 = arith.maximumf %14, %19 : vector<12x1xf32>
    %c24 = arith.constant 24 : index
    %c0_10 = arith.constant 0 : index
    %22 = vector.load %arg2[%c24, %c0_10] : memref<72x512xf32, #tpu.memory_space<vmem>>, vector<12x512xf32>
    %23 = arith.mulf %0, %22 : vector<12x512xf32>
    %24 = math.exp %23 : vector<12x512xf32>
    %cst_11 = arith.constant dense<0.000000e+00> : vector<12xf32>
    %25 = vector.multi_reduction <add>, %24, %cst_11 [1] : vector<12x512xf32> to vector<12xf32>
    %26 = vector.shape_cast %25 : vector<12xf32> to vector<12x1xf32>
    %27 = arith.addf %20, %26 : vector<12x1xf32>
    %28 = arith.maximumf %21, %26 : vector<12x1xf32>
    %c36 = arith.constant 36 : index
    %c0_12 = arith.constant 0 : index
    %29 = vector.load %arg2[%c36, %c0_12] : memref<72x512xf32, #tpu.memory_space<vmem>>, vector<12x512xf32>
    %30 = arith.mulf %0, %29 : vector<12x512xf32>
    %31 = math.exp %30 : vector<12x512xf32>
    %cst_13 = arith.constant dense<0.000000e+00> : vector<12xf32>
    %32 = vector.multi_reduction <add>, %31, %cst_13 [1] : vector<12x512xf32> to vector<12xf32>
    %33 = vector.shape_cast %32 : vector<12xf32> to vector<12x1xf32>
    %34 = arith.addf %27, %33 : vector<12x1xf32>
    %35 = arith.maximumf %28, %33 : vector<12x1xf32>
    %c48 = arith.constant 48 : index
    %c0_14 = arith.constant 0 : index
    %36 = vector.load %arg2[%c48, %c0_14] : memref<72x512xf32, #tpu.memory_space<vmem>>, vector<12x512xf32>
    %37 = arith.mulf %0, %36 : vector<12x512xf32>
    %38 = math.exp %37 : vector<12x512xf32>
    %cst_15 = arith.constant dense<0.000000e+00> : vector<12xf32>
    %39 = vector.multi_reduction <add>, %38, %cst_15 [1] : vector<12x512xf32> to vector<12xf32>
    %40 = vector.shape_cast %39 : vector<12xf32> to vector<12x1xf32>
    %41 = arith.addf %34, %40 : vector<12x1xf32>
    %42 = arith.maximumf %35, %40 : vector<12x1xf32>
    %c60 = arith.constant 60 : index
    %c0_16 = arith.constant 0 : index
    %43 = vector.load %arg2[%c60, %c0_16] : memref<72x512xf32, #tpu.memory_space<vmem>>, vector<12x512xf32>
    %44 = arith.mulf %0, %43 : vector<12x512xf32>
    %45 = math.exp %44 : vector<12x512xf32>
    %cst_17 = arith.constant dense<0.000000e+00> : vector<12xf32>
    %46 = vector.multi_reduction <add>, %45, %cst_17 [1] : vector<12x512xf32> to vector<12xf32>
    %47 = vector.shape_cast %46 : vector<12xf32> to vector<12x1xf32>
    %48 = arith.addf %41, %47 : vector<12x1xf32>
    %49 = arith.maximumf %42, %47 : vector<12x1xf32>
    %50 = math.log %5 : vector<12x1xf32>
    %51 = arith.addf %5, %48 : vector<12x1xf32>
    %52 = math.log %51 : vector<12x1xf32>
    %53 = arith.subf %50, %52 : vector<12x1xf32>
    %54 = vector.shape_cast %53 : vector<12x1xf32> to vector<1x12x1xf32>
    %cst_18 = arith.constant dense<0.000000e+00> : vector<1xf32>
    %55 = vector.multi_reduction <add>, %54, %cst_18 [1, 2] : vector<1x12x1xf32> to vector<1xf32>
    %56 = vector.shape_cast %55 : vector<1xf32> to vector<1x1x1xf32>
    %57 = vector.extract %56[0, 0, 0] : f32 from vector<1x1x1xf32>
    %cst_19 = arith.constant -0.0119047621 : f32
    %58 = arith.mulf %cst_19, %57 : f32
    %c0_20 = arith.constant 0 : index
    %c0_21 = arith.constant 0 : index
    %59 = memref.load %arg3[%c0_20, %c0_21] : memref<1x1xf32, #tpu.memory_space<smem>>
    memref.store %58, %arg3[%c0_20, %c0_21] : memref<1x1xf32, #tpu.memory_space<smem>>
    %60 = arith.cmpf ogt, %5, %49 : vector<12x1xf32>
    %61 = arith.extui %60 : vector<12x1xi1> to vector<12x1xi32>
    %62 = arith.sitofp %61 : vector<12x1xi32> to vector<12x1xf32>
    %63 = vector.shape_cast %62 : vector<12x1xf32> to vector<1x12x1xf32>
    %cst_22 = arith.constant dense<0.000000e+00> : vector<1xf32>
    %64 = vector.multi_reduction <add>, %63, %cst_22 [1, 2] : vector<1x12x1xf32> to vector<1xf32>
    %65 = vector.shape_cast %64 : vector<1xf32> to vector<1x1x1xf32>
    %66 = vector.extract %65[0, 0, 0] : f32 from vector<1x1x1xf32>
    %cst_23 = arith.constant 0.333333343 : f32
    %67 = arith.mulf %66, %cst_23 : f32
    %c0_24 = arith.constant 0 : index
    %c0_25 = arith.constant 0 : index
    %68 = memref.load %arg4[%c0_24, %c0_25] : memref<1x1xf32, #tpu.memory_space<smem>>
    memref.store %67, %arg4[%c0_24, %c0_25] : memref<1x1xf32, #tpu.memory_space<smem>>
    return
  }
}

</mosaic_0001>

<bundles_post_ra>
// kernel: infonce_loss.1
= control target key start
LH: loop header
LB: loop body
LE: loop exit
PB: predicated region body
PF: predicated region fallthrough
CT: control target
= control target key end

     0   :  { %10 = vsyncpa [#allocation3], 0  ;;  %s949_s0 = inlined_call_operand.vmem [shape: f32[12,512], index: 0, kind: input, shape index: {}]   ;;  %s950_s1 = inlined_call_operand.vmem [shape: f32[12,512], index: 1, kind: input, shape index: {}]   ;;  %s951_s2 = inlined_call_operand.hbm [shape: f32[72,512], index: 2, kind: input, shape index: {}]   ;;  %s952_s3 = inlined_call_operand.hbm [shape: f32[1,1], index: 3, kind: output, shape index: {0}]   ;;  %s953_s4 = inlined_call_operand.hbm [shape: f32[1,1], index: 4, kind: output, shape index: {1}]  }
   0x1   :  { %11 = vsyncpa [#allocation4], 0 }
   0x2   :  { %12 = vsyncpa [#allocation7], 0  ;;  %s721_s15 = smov [#allocation2]  }
   0x3   :  { %s22_s16 = sshll.u32 %s721_s15, 4  ;;  %s23_s16 = int_to_ptr.vmem [resolvable:$true] %s22_s16 }
   0x4   :  { %s687_s17 = scalar_lea.vmem %s23_s16, 4608  ;;  %p692_p1 = scmp.lt.s32.totalorder %s23_s16, %s23_s16 }
   0x5   :  { %p688_p0 = scmp.ne.s32.totalorder %s23_s16, %s687_s17  ;;  %p693_p2 = scmp.lt.s32.totalorder %s687_s17, %s687_s17 }
   0x7   :  { %p694_p3 = por %p693_p2, %p692_p1 }
   0x9   :  { %p695_p4 = pnand %p694_p3, %p688_p0 }
   0xb   :  { %698 = shalt.err (!%p695_p4)
}
   0xc   :  { %s722_s18 = smov 512   ;;  %s723_s19 = smov 32  }
   0xd   :  { %28 = dma.hbm_to_vmem [thread:$0]  %s951_s2, 4608, %s23_s16, [#allocation3], %s722_s18, %s722_s18, %s723_s19  }
   0xe   :  { %715 = dma.done.wait [#allocation3], 4608  }
   0xf   :  { %716 = vsyncadd [#allocation3], 4294962688  ;;  %v758_v0 = vld [vmem:[%s949_s0] sm:$0xff]  ;;  %v763_v1 = vld [vmem:[%s949_s0 + $0x8] sm:$0xff]  ;;  %vm77_vm0 = vcmask 1043456   ;;  %vm483_vm2 = vcmask 7168  }
  0x10   :  { %v768_v2 = vld [vmem:[%s949_s0 + $0x10] sm:$0xff]  ;;  %v773_v3 = vld [vmem:[%s949_s0 + $0x18] sm:$0xff]  ;;  %v87_v4 = vld [vmem:[#allocation2] sm:$0xff]  ;;  %vm485_vm3 = vcmask 3072   ;;  %s725_s29 = smov [#allocation5]   ;;  %s726_s5 = smov [#allocation6]  }
  0x11   :  { %v88_v5 = vld [vmem:[#allocation2 + $0x8] sm:$0xff]  ;;  %v89_v6 = vld [vmem:[#allocation2 + $0x10] sm:$0xff]  ;;  %v90_v7 = vld [vmem:[#allocation2 + $0x18] sm:$0xff]  ;;  %v95_v8 = vmul.f32 %v87_v4, %v758_v0 }
  0x12   :  { %v96_v9 = vmul.f32 %v88_v5, %v763_v1  ;;  %v780_v10 = vld [vmem:[%s949_s0 + $0x20] sm:$0xf]  ;;  %v97_v11 = vmul.f32 %v89_v6, %v768_v2  ;;  %v98_v12 = vmul.f32 %v90_v7, %v773_v3  ;;  %v787_v13 = vld [vmem:[%s949_s0 + $0x28] sm:$0xf]  ;;  %v792_v14 = vld [vmem:[%s949_s0 + $0x30] sm:$0xf] }
  0x13   :  { %v797_v15 = vld [vmem:[%s949_s0 + $0x38] sm:$0xf]  ;;  %v103_v16 = vmul.f32 1.442695, %v95_v8  ;;  %v219_v18 = vld [vmem:[#allocation2 + $0x80] sm:$0xf] }
  0x14   :  { %v105_v17 = vmul.f32 1.442695, %v96_v9  ;;  %v107_v19 = vmul.f32 1.442695, %v97_v11  ;;  %v109_v20 = vmul.f32 1.442695, %v98_v12  ;;  %v227_v22 = vmul.f32 %v219_v18, %v780_v10 }
  0x15   :  { %v220_v21 = vld [vmem:[#allocation2 + $0x88] sm:$0xf]  ;;  %559 = vpow2.f32 %v103_v16  ;;  %v221_v23 = vld [vmem:[#allocation2 + $0x90] sm:$0xf]  ;;  %v222_v24 = vld [vmem:[#allocation2 + $0x98] sm:$0xf] }
  0x16   :  { %v228_v25 = vmul.f32 %v220_v21, %v787_v13  ;;  %v215_v26 = vld [vmem:[#allocation2 + $0x60] sm:$0xff]  ;;  %561 = vpow2.f32 %v105_v17  ;;  %v229_v27 = vmul.f32 %v221_v23, %v792_v14  ;;  %v230_v28 = vmul.f32 %v222_v24, %v797_v15  ;;  %v216_v30 = vld [vmem:[#allocation2 + $0x68] sm:$0xff]  ;;  %v217_v31 = vld [vmem:[#allocation2 + $0x70] sm:$0xff] }
  0x17   :  { %v239_v29 = vmul.f32 1.442695, %v227_v22  ;;  %v218_v32 = vld [vmem:[#allocation2 + $0x78] sm:$0xff]  ;;  %563 = vpow2.f32 %v107_v19  ;;  %v223_v34 = vmul.f32 %v215_v26, %v758_v0  ;;  %v224_v35 = vmul.f32 %v216_v30, %v763_v1  ;;  %v347_v36 = vld [vmem:[#allocation2 + $0xe0] sm:$0xf]  ;;  %v344_v50 = vld [vmem:[#allocation2 + $0xc8] sm:$0xff] }
  0x18   :  { %v241_v33 = vmul.f32 1.442695, %v228_v25  ;;  %v348_v37 = vld [vmem:[#allocation2 + $0xe8] sm:$0xf]  ;;  %565 = vpow2.f32 %v109_v20  ;;  %v243_v38 = vmul.f32 1.442695, %v229_v27  ;;  %v225_v40 = vmul.f32 %v217_v31, %v768_v2 }
  0x19   :  { %v245_v39 = vmul.f32 1.442695, %v230_v28  ;;  %v349_v41 = vld [vmem:[#allocation2 + $0xf0] sm:$0xf]  ;;  %567 = vpow2.f32 %v239_v29  ;;  %v226_v42 = vmul.f32 %v218_v32, %v773_v3  ;;  %v231_v43 = vmul.f32 1.442695, %v223_v34 }
  0x1a   :  { %v233_v44 = vmul.f32 1.442695, %v224_v35  ;;  %v350_v45 = vld [vmem:[#allocation2 + $0xf8] sm:$0xf]  ;;  %569 = vpow2.f32 %v241_v33  ;;  %v235_v46 = vmul.f32 1.442695, %v225_v40  ;;  %v355_v47 = vmul.f32 %v347_v36, %v780_v10 }
  0x1b   :  { %v356_v48 = vmul.f32 %v348_v37, %v787_v13  ;;  %v343_v49 = vld [vmem:[#allocation2 + $0xc0] sm:$0xff]  ;;  %v345_v51 = vld [vmem:[#allocation2 + $0xd0] sm:$0xff]  ;;  %571 = vpow2.f32 %v243_v38  ;;  %v237_v52 = vmul.f32 1.442695, %v226_v42  ;;  %v357_v53 = vmul.f32 %v349_v41, %v792_v14  ;;  %v346_v55 = vld [vmem:[#allocation2 + $0xd8] sm:$0xff] }
  0x1c   :  { %v358_v54 = vmul.f32 %v350_v45, %v797_v15  ;;  %v137_v56 = vld [vmem:[#allocation2 + $0x20] sm:$0xf0]  ;;  %573 = vpow2.f32 %v245_v39  ;;  %v367_v58 = vmul.f32 1.442695, %v355_v47  ;;  %v351_v60 = vmul.f32 %v343_v49, %v758_v0  ;;  %v138_v61 = vld [vmem:[#allocation2 + $0x28] sm:$0xf0] }
  0x1d   :  { %v811_v57 = vld [vmem:[#allocation2 + $0x40] sm:$0xff]  ;;  %v369_v59 = vmul.f32 1.442695, %v356_v48  ;;  %575 = vpow2.f32 %v231_v43  ;;  %v371_v62 = vmul.f32 1.442695, %v357_v53  ;;  %v352_v4 = vmul.f32 %v344_v50, %v763_v1  ;;  %v817_v11 = vld [vmem:[#allocation2 + $0x48] sm:$0xff] }
  0x1e   :  { %v373_v63 = vmul.f32 1.442695, %v358_v54  ;;  %v139_v5 = vld [vmem:[#allocation2 + $0x30] sm:$0xf0]  ;;  %577 = vpow2.f32 %v233_v44  ;;  %v353_v6 = vmul.f32 %v345_v51, %v768_v2  ;;  %v354_v7 = vmul.f32 %v346_v55, %v773_v3  ;;  %v140_v9 = vld [vmem:[#allocation2 + $0x38] sm:$0xf0] }
  0x1f   :  { %v359_v8 = vmul.f32 1.442695, %v351_v60  ;;  %579 = vpow2.f32 %v235_v46  ;;  %v361_v12 = vmul.f32 1.442695, %v352_v4  ;;  %v819_v16 = vld [vmem:[#allocation2 + $0x50] sm:$0xff]  ;;  %v821_v17 = vld [vmem:[#allocation2 + $0x58] sm:$0xff] }
  0x20   :  { %v153_v18 = vrot.slane %v137_v56, 4  ;;  %v154_v19 = vrot.slane %v811_v57, 4  ;;  %581 = vpow2.f32 %v237_v52  ;;  %v363_v20 = vmul.f32 1.442695, %v353_v6  ;;  %v91_v26 = vld [vmem:[#allocation2 + $0x20] sm:$0xf] }
  0x21   :  { %v365_v21 = vmul.f32 1.442695, %v354_v7  ;;  %v156_v22 = vrot.slane %v138_v61, 4  ;;  %583 = vpow2.f32 %v367_v58  ;;  %v157_v24 = vrot.slane %v817_v11, 4  ;;  %v92_v34 = vld [vmem:[#allocation2 + $0x28] sm:$0xf] }
  0x22   :  { %v155_v23 = vsel %vm77_vm0, %v153_v18, %v154_v19  ;;  %v159_v25 = vrot.slane %v139_v5, 4  ;;  %v560_v27 = vpop.eup %559  ;;  %585 = vpow2.f32 %v369_v59  ;;  %v160_v28 = vrot.slane %v819_v16, 4  ;;  %v93_v47 = vld [vmem:[#allocation2 + $0x30] sm:$0xf]  ;;  %v94_v48 = vld [vmem:[#allocation2 + $0x38] sm:$0xf] }
  0x23   :  { %v162_v29 = vrot.slane %v140_v9, 4  ;;  %v163_v30 = vrot.slane %v821_v17, 4  ;;  %v562_v31 = vpop.eup %561  ;;  %587 = vpow2.f32 %v371_v62  ;;  %v158_v32 = vsel %vm77_vm0, %v156_v22, %v157_v24  ;;  %v266_v57 = vld [vmem:[#allocation2 + $0x88] sm:$0xf0] }
  0x24   :  { %v173_v33 = vmul.f32 %v155_v23, %v758_v0  ;;  %v99_v35 = vmul.f32 %v91_v26, %v780_v10  ;;  %v564_v36 = vpop.eup %563  ;;  %v119_v37 = vadd.f32 %v562_v31, %v560_v27  ;;  %589 = vpow2.f32 %v373_v63  ;;  %v270_v17 = vld [vmem:[#allocation2 + $0xa8] sm:$0xff] }
  0x25   :  { %v161_v38 = vsel %vm77_vm0, %v159_v25, %v160_v28  ;;  %v164_v39 = vsel %vm77_vm0, %v162_v29, %v163_v30  ;;  %v566_v40 = vpop.eup %565  ;;  %591 = vpow2.f32 %v359_v8  ;;  %v174_v41 = vmul.f32 %v158_v32, %v763_v1 }
  0x26   :  { %v175_v42 = vmul.f32 %v161_v38, %v768_v2  ;;  %v176_v43 = vmul.f32 %v164_v39, %v773_v3  ;;  %v568_v44 = vpop.eup %567  ;;  %v120_v45 = vadd.f32 %v564_v36, %v119_v37  ;;  %593 = vpow2.f32 %v361_v12  ;;  %v267_v39 = vld [vmem:[#allocation2 + $0x90] sm:$0xf0] }
  0x27   :  { %v181_v46 = vmul.f32 1.442695, %v173_v33  ;;  %v100_v49 = vmul.f32 %v92_v34, %v787_v13  ;;  %v570_v50 = vpop.eup %569  ;;  %v252_v51 = vsel %vm77_vm0, %v568_v44, 0.0  ;;  %595 = vpow2.f32 %v363_v20  ;;  %v265_v33 = vld [vmem:[#allocation2 + $0x80] sm:$0xf0] }
  0x28   :  { %v183_v52 = vmul.f32 1.442695, %v174_v41  ;;  %v185_v53 = vmul.f32 1.442695, %v175_v42  ;;  %v572_v54 = vpop.eup %571  ;;  %v121_v55 = vadd.f32 %v566_v40, %v120_v45  ;;  %v253_v56 = vsel %vm77_vm0, %v570_v50, 0.0  ;;  %v271_v42 = vld [vmem:[#allocation2 + $0xb0] sm:$0xff] }
  0x29   :  { %597 = vpow2.f32 %v365_v21  ;;  %v187_v58 = vmul.f32 1.442695, %v176_v43  ;;  %v574_v59 = vpop.eup %573  ;;  %v254_v60 = vadd.f32 %v253_v56, %v252_v51  ;;  %v255_v61 = vsel %vm77_vm0, %v572_v54, 0.0 }
  0x2a   :  { %599 = vpow2.f32 %v181_v46  ;;  %v101_v62 = vmul.f32 %v93_v47, %v792_v14  ;;  %v576_v63 = vpop.eup %575  ;;  %122 = vadd.xlane.f32.xlu0 %v121_v55  ;;  %v257_v4 = vsel %vm77_vm0, %v574_v59, 0.0  ;;  %v102_v5 = vmul.f32 %v94_v48, %v797_v15  ;;  %v268_v46 = vld [vmem:[#allocation2 + $0x98] sm:$0xf0] }
  0x2b   :  { %601 = vpow2.f32 %v183_v52  ;;  %v111_v6 = vmul.f32 1.442695, %v99_v35  ;;  %v578_v7 = vpop.eup %577  ;;  %v256_v8 = vadd.f32 %v255_v61, %v254_v60  ;;  %v113_v9 = vmul.f32 1.442695, %v100_v49  ;;  %v272_v47 = vld [vmem:[#allocation2 + $0xb8] sm:$0xff] }
  0x2c   :  { %603 = vpow2.f32 %v185_v53  ;;  %v115_v12 = vmul.f32 1.442695, %v101_v62  ;;  %v580_v16 = vpop.eup %579  ;;  %v247_v18 = vadd.f32 %v578_v7, %v576_v63  ;;  %v117_v20 = vmul.f32 1.442695, %v102_v5 }
  0x2d   :  { %605 = vpow2.f32 %v187_v58  ;;  %v177_v21 = vmul.f32 %v154_v19, %v780_v10  ;;  %v582_v22 = vpop.eup %581  ;;  %v258_v23 = vadd.f32 %v257_v4, %v256_v8  ;;  %v178_v25 = vmul.f32 %v157_v24, %v787_v13  ;;  %v269_v24 = vld [vmem:[#allocation2 + $0xa0] sm:$0xff] }
  0x2e   :  { %607 = vpow2.f32 %v111_v6  ;;  %v179_v26 = vmul.f32 %v160_v28, %v792_v14  ;;  %v584_v27 = vpop.eup %583  ;;  %v248_v29 = vadd.f32 %v580_v16, %v247_v18  ;;  %v180_v31 = vmul.f32 %v163_v30, %v797_v15 }
  0x2f   :  { %609 = vpow2.f32 %v113_v9  ;;  %v189_v32 = vmul.f32 1.442695, %v177_v21  ;;  %v586_v19 = vpop.eup %585  ;;  %259 = vadd.xlane.f32.xlu1 %v258_v23  ;;  %v380_v34 = vsel %vm77_vm0, %v584_v27, 0.0  ;;  %v191_v35 = vmul.f32 1.442695, %v178_v25 }
  0x30   :  { %611 = vpow2.f32 %v115_v12  ;;  %v193_v11 = vmul.f32 1.442695, %v179_v26  ;;  %v588_v36 = vpop.eup %587  ;;  %v249_v28 = vadd.f32 %v582_v22, %v248_v29  ;;  %v381_v37 = vsel %vm77_vm0, %v586_v19, 0.0 }
  0x31   :  { %613 = vpow2.f32 %v117_v20  ;;  %v195_v38 = vmul.f32 1.442695, %v180_v31  ;;  %v590_v30 = vpop.eup %589  ;;  %v382_v40 = vadd.f32 %v381_v37, %v380_v34  ;;  %v383_v41 = vsel %vm77_vm0, %v588_v36, 0.0 }
  0x32   :  { %615 = vpow2.f32 %v189_v32  ;;  %v281_v43 = vrot.slane %v265_v33, 4  ;;  %v592_v44 = vpop.eup %591  ;;  %250 = vadd.xlane.f32.xlu0 %v249_v28  ;;  %v385_v45 = vsel %vm77_vm0, %v590_v30, 0.0  ;;  %v282_v48 = vrot.slane %v269_v24, 4  ;;  %v394_v24 = vld [vmem:[#allocation2 + $0xe8] sm:$0xf0] }
  0x33   :  { %617 = vpow2.f32 %v191_v35  ;;  %v284_v49 = vrot.slane %v266_v57, 4  ;;  %v594_v50 = vpop.eup %593  ;;  %v384_v51 = vadd.f32 %v383_v41, %v382_v40  ;;  %v285_v52 = vrot.slane %v270_v17, 4  ;;  %v393_v57 = vld [vmem:[#allocation2 + $0xe0] sm:$0xf0] }
  0x34   :  { %619 = vpow2.f32 %v193_v11  ;;  %v287_v53 = vrot.slane %v267_v39, 4  ;;  %v596_v54 = vpop.eup %595  ;;  %v375_v55 = vadd.f32 %v594_v50, %v592_v44  ;;  %v283_v56 = vsel %vm77_vm0, %v281_v43, %v282_v48  ;;  %v397_v39 = vld [vmem:[#allocation2 + $0x100] sm:$0xff] }
  0x35   :  { %621 = vpow2.f32 %v195_v38  ;;  %v288_v58 = vrot.slane %v271_v42, 4  ;;  %v386_v60 = vadd.f32 %v385_v45, %v384_v51  ;;  %v286_v61 = vsel %vm77_vm0, %v284_v49, %v285_v52  ;;  %v398_v42 = vld [vmem:[#allocation2 + $0x108] sm:$0xff] }
  0x36   :  { %v598_v59 = vpop.eup %597  ;;  %v290_v62 = vrot.slane %v268_v46, 4  ;;  %v291_v63 = vrot.slane %v272_v47, 4  ;;  %v376_v5 = vadd.f32 %v596_v54, %v375_v55  ;;  %v301_v7 = vmul.f32 %v283_v56, %v758_v0  ;;  %v395_v46 = vld [vmem:[#allocation2 + $0xf0] sm:$0xf0]  ;;  %v396_v55 = vld [vmem:[#allocation2 + $0xf8] sm:$0xf0] }
  0x37   :  { %v600_v4 = vpop.eup %599  ;;  %v289_v6 = vsel %vm77_vm0, %v287_v53, %v288_v58  ;;  %v302_v8 = vmul.f32 %v286_v61, %v763_v1  ;;  %387 = vadd.xlane.f32.xlu1 %v386_v60  ;;  %v305_v18 = vmul.f32 %v282_v48, %v780_v10  ;;  %v306_v20 = vmul.f32 %v285_v52, %v787_v13  ;;  %v399_v56 = vld [vmem:[#allocation2 + $0x110] sm:$0xff]  ;;  %v400_v61 = vld [vmem:[#allocation2 + $0x118] sm:$0xff] }
  0x38   :  { %v602_v9 = vpop.eup %601  ;;  %v292_v12 = vsel %vm77_vm0, %v290_v62, %v291_v63  ;;  %v303_v16 = vmul.f32 %v289_v6, %v768_v2  ;;  %v377_v22 = vadd.f32 %v598_v59, %v376_v5  ;;  %v309_v26 = vmul.f32 1.442695, %v301_v7 }
  0x39   :  { %v604_v21 = vpop.eup %603  ;;  %v197_v23 = vadd.f32 %v602_v9, %v600_v4  ;;  %v304_v25 = vmul.f32 %v292_v12, %v773_v3  ;;  %v311_v29 = vmul.f32 1.442695, %v302_v8  ;;  %v307_v32 = vmul.f32 %v288_v58, %v792_v14 }
  0x3a   :  { %v606_v27 = vpop.eup %605  ;;  %v313_v31 = vmul.f32 1.442695, %v303_v16  ;;  %v308_v33 = vmul.f32 %v291_v63, %v797_v15  ;;  %378 = vadd.xlane.f32.xlu0 %v377_v22  ;;  %623 = vpow2.f32 %v309_v26  ;;  %v317_v11 = vmul.f32 1.442695, %v305_v18 }
  0x3b   :  { %v608_v19 = vpop.eup %607  ;;  %v198_v34 = vadd.f32 %v604_v21, %v197_v23  ;;  %v315_v35 = vmul.f32 1.442695, %v304_v25  ;;  %625 = vpow2.f32 %v311_v29  ;;  %v319_v37 = vmul.f32 1.442695, %v306_v20  ;;  %v40_v29 = vld [vmem:[%s950_s1] sm:$0xff] }
  0x3c   :  { %v610_v36 = vpop.eup %609  ;;  %v124_v28 = vsel %vm77_vm0, %v608_v19, 0.0  ;;  %v321_v38 = vmul.f32 1.442695, %v307_v32  ;;  %627 = vpow2.f32 %v313_v31  ;;  %v323_v41 = vmul.f32 1.442695, %v308_v33  ;;  %v41_v19 = vld [vmem:[%s950_s1 + $0x8] sm:$0xff] }
  0x3d   :  { %v612_v17 = vpop.eup %611  ;;  %v199_v30 = vadd.f32 %v606_v27, %v198_v34  ;;  %v125_v40 = vsel %vm77_vm0, %v610_v36, 0.0  ;;  %629 = vpow2.f32 %v315_v35  ;;  %v409_v47 = vrot.slane %v393_v57, 4  ;;  %v42_v34 = vld [vmem:[%s950_s1 + $0x10] sm:$0xff]  ;;  %v43_v35 = vld [vmem:[%s950_s1 + $0x18] sm:$0xff] }
  0x3e   :  { %v614_v43 = vpop.eup %613  ;;  %v126_v44 = vadd.f32 %v125_v40, %v124_v28  ;;  %v127_v45 = vsel %vm77_vm0, %v612_v17, 0.0  ;;  %631 = vpow2.f32 %v317_v11  ;;  %v410_v50 = vrot.slane %v397_v39, 4 }
  0x3f   :  { %v616_v48 = vpop.eup %615  ;;  %200 = vadd.xlane.f32.xlu1 %v199_v30  ;;  %v129_v49 = vsel %vm77_vm0, %v614_v43, 0.0  ;;  %v412_v51 = vrot.slane %v394_v24, 4  ;;  %633 = vpow2.f32 %v319_v37  ;;  %v413_v58 = vrot.slane %v398_v42, 4  ;;  %v44_v37 = vld [vmem:[%s950_s1 + $0x20] sm:$0xf] }
  0x40   :  { %v618_v52 = vpop.eup %617  ;;  %v128_v53 = vadd.f32 %v127_v45, %v126_v44  ;;  %v202_v54 = vsel %vm77_vm0, %v616_v48, 0.0  ;;  %635 = vpow2.f32 %v321_v38  ;;  %v411_v62 = vsel %vm77_vm0, %v409_v47, %v410_v50  ;;  %v45_v48 = vld [vmem:[%s950_s1 + $0x28] sm:$0xf] }
  0x41   :  { %v620_v59 = vpop.eup %619  ;;  %v203_v60 = vsel %vm77_vm0, %v618_v52, 0.0  ;;  %v415_v63 = vrot.slane %v395_v46, 4  ;;  %637 = vpow2.f32 %v323_v41  ;;  %v414_v9 = vsel %vm77_vm0, %v412_v51, %v413_v58 }
  0x42   :  { %v622_v4 = vpop.eup %621  ;;  %v130_v5 = vadd.f32 %v129_v49, %v128_v53  ;;  %v204_v6 = vadd.f32 %v203_v60, %v202_v54  ;;  %v205_v7 = vsel %vm77_vm0, %v620_v59, 0.0  ;;  %v416_v12 = vrot.slane %v399_v56, 4 }
  0x43   :  { %v207_v8 = vsel %vm77_vm0, %v622_v4, 0.0  ;;  %v418_v16 = vrot.slane %v396_v55, 4  ;;  %v419_v20 = vrot.slane %v400_v61, 4  ;;  %v429_v21 = vmul.f32 %v411_v62, %v758_v0  ;;  %v47_v55 = vld [vmem:[%s950_s1 + $0x38] sm:$0xf] }
  0x44   :  { %131 = vadd.xlane.f32.xlu0 %v130_v5  ;;  %v206_v18 = vadd.f32 %v205_v7, %v204_v6  ;;  %v430_v22 = vmul.f32 %v414_v9, %v763_v1  ;;  %v417_v23 = vsel %vm77_vm0, %v415_v63, %v416_v12  ;;  %v433_v25 = vmul.f32 %v410_v50, %v780_v10 }
  0x45   :  { %v434_v26 = vmul.f32 %v413_v58, %v787_v13  ;;  %v435_v27 = vmul.f32 %v416_v12, %v792_v14  ;;  %v420_v32 = vsel %vm77_vm0, %v418_v16, %v419_v20  ;;  %v431_v33 = vmul.f32 %v417_v23, %v768_v2 }
  0x46   :  { %v208_v31 = vadd.f32 %v207_v8, %v206_v18  ;;  %v437_v57 = vmul.f32 1.442695, %v429_v21  ;;  %v432_v11 = vmul.f32 %v420_v32, %v773_v3  ;;  %v439_v24 = vmul.f32 1.442695, %v430_v22 }
  0x47   :  { %v436_v36 = vmul.f32 %v419_v20, %v797_v15  ;;  %v445_v28 = vmul.f32 1.442695, %v433_v25  ;;  %v624_v38 = vpop.eup %623  ;;  %v441_v39 = vmul.f32 1.442695, %v431_v33  ;;  %v447_v17 = vmul.f32 1.442695, %v434_v26 }
  0x48   :  { %209 = vadd.xlane.f32.xlu1 %v208_v31  ;;  %639 = vpow2.f32 %v437_v57  ;;  %v449_v30 = vmul.f32 1.442695, %v435_v27  ;;  %v626_v40 = vpop.eup %625  ;;  %v443_v41 = vmul.f32 1.442695, %v432_v11  ;;  %v48_v43 = vmul.f32 %v40_v29, %v758_v0  ;;  %v46_v0 = vld [vmem:[%s950_s1 + $0x30] sm:$0xf] }
  0x49   :  { %641 = vpow2.f32 %v439_v24  ;;  %v451_v42 = vmul.f32 1.442695, %v436_v36  ;;  %v628_v44 = vpop.eup %627  ;;  %v325_v45 = vadd.f32 %v626_v40, %v624_v38  ;;  %v49_v46 = vmul.f32 %v41_v19, %v763_v1 }
  0x4a   :  { %643 = vpow2.f32 %v441_v39  ;;  %v50_v47 = vmul.f32 %v42_v34, %v768_v2  ;;  %v630_v49 = vpop.eup %629  ;;  %v51_v50 = vmul.f32 %v43_v35, %v773_v3  ;;  %v56_v51 = vmul.f32 1.442695, %v48_v43 }
  0x4b   :  { %645 = vpow2.f32 %v443_v41  ;;  %v52_v52 = vmul.f32 %v44_v37, %v780_v10  ;;  %v632_v53 = vpop.eup %631  ;;  %v326_v54 = vadd.f32 %v628_v44, %v325_v45  ;;  %v58_v1 = vmul.f32 1.442695, %v49_v46 }
  0x4c   :  { %647 = vpow2.f32 %v445_v28  ;;  %v60_v2 = vmul.f32 1.442695, %v50_v47  ;;  %v634_v56 = vpop.eup %633  ;;  %v330_v58 = vsel %vm77_vm0, %v632_v53, 0.0  ;;  %v62_v3 = vmul.f32 1.442695, %v51_v50 }
  0x4d   :  { %649 = vpow2.f32 %v447_v17  ;;  %v53_v59 = vmul.f32 %v45_v48, %v787_v13  ;;  %v636_v60 = vpop.eup %635  ;;  %v327_v61 = vadd.f32 %v630_v49, %v326_v54  ;;  %v331_v10 = vsel %vm77_vm0, %v634_v56, 0.0 }
  0x4e   :  { %651 = vpow2.f32 %v449_v30  ;;  %v54_v62 = vmul.f32 %v46_v0, %v792_v14  ;;  %v638_v63 = vpop.eup %637  ;;  %v332_v4 = vadd.f32 %v331_v10, %v330_v58  ;;  %v333_v5 = vsel %vm77_vm0, %v636_v60, 0.0 }
  0x4f   :  { %653 = vpow2.f32 %v451_v42  ;;  %v55_v6 = vmul.f32 %v47_v55, %v797_v15  ;;  %328 = vadd.xlane.f32.xlu0 %v327_v61  ;;  %v335_v7 = vsel %vm77_vm0, %v638_v63, 0.0  ;;  %v64_v8 = vmul.f32 1.442695, %v52_v52 }
  0x50   :  { %655 = vpow2.f32 %v56_v51  ;;  %v334_v13 = vadd.f32 %v333_v5, %v332_v4  ;;  %v66_v9 = vmul.f32 1.442695, %v53_v59  ;;  %v68_v12 = vmul.f32 1.442695, %v54_v62 }
  0x51   :  { %657 = vpow2.f32 %v58_v1  ;;  %v70_v14 = vmul.f32 1.442695, %v55_v6 }
  0x52   :  { %659 = vpow2.f32 %v60_v2  ;;  %v336_v16 = vadd.f32 %v335_v7, %v334_v13 }
  0x53   :  { %661 = vpow2.f32 %v62_v3 }
  0x54   :  { %663 = vpow2.f32 %v64_v8  ;;  %337 = vadd.xlane.f32.xlu1 %v336_v16 }
  0x55   :  { %v640_v18 = vpop.eup %639  ;;  %665 = vpow2.f32 %v66_v9 }
  0x56   :  { %v642_v20 = vpop.eup %641  ;;  %667 = vpow2.f32 %v68_v12 }
  0x57   :  { %v644_v15 = vpop.eup %643  ;;  %v453_v21 = vadd.f32 %v642_v20, %v640_v18  ;;  %669 = vpow2.f32 %v70_v14 }
  0x58   :  { %v646_v22 = vpop.eup %645 }
  0x59   :  { %v648_v23 = vpop.eup %647  ;;  %v454_v25 = vadd.f32 %v644_v15, %v453_v21 }
  0x5a   :  { %v650_v26 = vpop.eup %649  ;;  %v458_v27 = vsel %vm77_vm0, %v648_v23, 0.0 }
  0x5b   :  { %v652_v29 = vpop.eup %651  ;;  %v455_v31 = vadd.f32 %v646_v22, %v454_v25  ;;  %v459_v32 = vsel %vm77_vm0, %v650_v26, 0.0  ;;  %v724_v26 = vmov 0.0  }
  0x5c   :  { %v654_v33 = vpop.eup %653  ;;  %v460_v57 = vadd.f32 %v459_v32, %v458_v27  ;;  %v461_v19 = vsel %vm77_vm0, %v652_v29, 0.0 }
  0x5d   :  { %v656_v34 = vpop.eup %655  ;;  %456 = vadd.xlane.f32.xlu0 %v455_v31  ;;  %v463_v35 = vsel %vm77_vm0, %v654_v33, 0.0 }
  0x5e   :  { %v658_v11 = vpop.eup %657  ;;  %v462_v24 = vadd.f32 %v461_v19, %v460_v57 }
  0x5f   :  { %v660_v36 = vpop.eup %659  ;;  %v72_v28 = vadd.f32 %v658_v11, %v656_v34 }
  0x60   :  { %v662_v37 = vpop.eup %661  ;;  %v464_v38 = vadd.f32 %v463_v35, %v462_v24 }
  0x61   :  { %v664_v39 = vpop.eup %663  ;;  %v73_v17 = vadd.f32 %v660_v36, %v72_v28 }
  0x62   :  { %v666_v30 = vpop.eup %665  ;;  %465 = vadd.xlane.f32.xlu1 %v464_v38  ;;  %v78_v40 = vsel %vm77_vm0, %v664_v39, 0.0 }
  0x63   :  { %v668_v41 = vpop.eup %667  ;;  %v74_v42 = vadd.f32 %v662_v37, %v73_v17  ;;  %v79_v43 = vsel %vm77_vm0, %v666_v30, 0.0 }
  0x64   :  { %v670_v44 = vpop.eup %669  ;;  %v80_v45 = vadd.f32 %v79_v43, %v78_v40  ;;  %v81_v46 = vsel %vm77_vm0, %v668_v41, 0.0 }
  0x65   :  { %75 = vadd.xlane.f32.xlu0 %v74_v42  ;;  %v83_v47 = vsel %vm77_vm0, %v670_v44, 0.0 }
  0x66   :  { %v82_v48 = vadd.f32 %v81_v46, %v80_v45 }
  0x68   :  { %v84_v49 = vadd.f32 %v83_v47, %v82_v48 }
  0x6a   :  { %85 = vadd.xlane.f32.xlu1 %v84_v49 }
  0xb3   :  { %v123_v50 = vpop.xlane.xlu0 %122 }
  0xb4   :  { %v135_v55 = vmax.f32 %v123_v50, 0.0 }
  0xb8   :  { %v260_v51 = vpop.xlane.xlu1 %259 }
  0xbb   :  { %v251_v0 = vpop.xlane.xlu0 %250 }
  0xc0   :  { %v388_v52 = vpop.xlane.xlu1 %387 }
  0xc3   :  { %v379_v53 = vpop.xlane.xlu0 %378 }
  0xc8   :  { %v201_v54 = vpop.xlane.xlu1 %200 }
  0xc9   :  { %v211_v58 = vadd.f32 %v201_v54, %v123_v50  ;;  %v213_v3 = vmax.f32 %v135_v55, %v201_v54 }
  0xcb   :  { %v261_v10 = vadd.f32 %v251_v0, %v211_v58  ;;  %v263_v62 = vmax.f32 %v213_v3, %v251_v0 }
  0xcd   :  { %v132_v1 = vpop.xlane.xlu0 %131 }
  0xce   :  { %v136_v2 = vmax.f32 %v132_v1, 0.0 }
  0xd1   :  { %v210_v56 = vpop.xlane.xlu1 %209 }
  0xd2   :  { %v214_v59 = vmax.f32 %v136_v2, %v210_v56  ;;  %v212_v60 = vadd.f32 %v210_v56, %v132_v1 }
  0xd4   :  { %v264_v63 = vmax.f32 %v214_v59, %v260_v51  ;;  %v262_v7 = vadd.f32 %v260_v51, %v212_v60 }
  0xd8   :  { %v329_v61 = vpop.xlane.xlu0 %328 }
  0xd9   :  { %v339_v4 = vadd.f32 %v329_v61, %v261_v10  ;;  %v341_v5 = vmax.f32 %v263_v62, %v329_v61 }
  0xdb   :  { %v389_v9 = vadd.f32 %v379_v53, %v339_v4  ;;  %v391_v12 = vmax.f32 %v341_v5, %v379_v53 }
  0xdd   :  { %v338_v6 = vpop.xlane.xlu1 %337 }
  0xde   :  { %v342_v8 = vmax.f32 %v264_v63, %v338_v6  ;;  %v340_v16 = vadd.f32 %v338_v6, %v262_v7 }
  0xe0   :  { %v392_v14 = vmax.f32 %v342_v8, %v388_v52  ;;  %v390_v21 = vadd.f32 %v388_v52, %v340_v16 }
  0xe6   :  { %v457_v13 = vpop.xlane.xlu0 %456 }
  0xe7   :  { %v467_v18 = vadd.f32 %v457_v13, %v389_v9  ;;  %v469_v20 = vmax.f32 %v391_v12, %v457_v13 }
  0xeb   :  { %v466_v15 = vpop.xlane.xlu1 %465 }
  0xec   :  { %v470_v25 = vmax.f32 %v392_v14, %v466_v15  ;;  %v468_v29 = vadd.f32 %v466_v15, %v390_v21 }
  0xee   :  { %v76_v22 = vpop.xlane.xlu0 %75 }
  0xef   :  { %671 = vlog2.f32 %v76_v22  ;;  %v475_v23 = vadd.f32 %v467_v18, %v76_v22  ;;  %vm500_vm1 = vcmp.gt.f32.partialorder %v76_v22, %v469_v20 }
  0xf0   :  { %v547_v27 = vsel %vm500_vm1, 1.0, %v724_v26 }
  0xf1   :  { %673 = vlog2.f32 %v475_v23  ;;  %v506_v33 = vsel %vm483_vm2, %v547_v27, 0.0 }
  0xf3   :  { %v86_v31 = vpop.xlane.xlu1 %85 }
  0xf4   :  { %675 = vlog2.f32 %v86_v31  ;;  %v476_v32 = vadd.f32 %v468_v29, %v86_v31  ;;  %vm501_vm4 = vcmp.gt.f32.partialorder %v86_v31, %v470_v25 }
  0xf5   :  { %v548_v57 = vsel %vm501_vm4, 1.0, %v724_v26 }
  0xf6   :  { %677 = vlog2.f32 %v476_v32  ;;  %v507_v19 = vsel %vm485_vm3, %v548_v57, 0.0 }
  0xf7   :  { %v508_v34 = vadd.f32 %v507_v19, %v506_v33 }
  0xf9   :  { %509 = vadd.xlane.f32.xlu1 %v508_v34 }
  0xfc   :  { %v672_v35 = vpop.eup %671 }
  0xfd   :  { %v472_v24 = vmul.f32 0.6931472, %v672_v35 }
  0xfe   :  { %v674_v11 = vpop.eup %673 }
  0xff   :  { %v478_v36 = vmul.f32 0.6931472, %v674_v11 }
 0x101   :  { %v676_v28 = vpop.eup %675  ;;  %v481_v37 = vsub.f32 %v472_v24, %v478_v36 }
 0x102   :  { %v474_v39 = vmul.f32 0.6931472, %v676_v28 }
 0x103   :  { %v678_v38 = vpop.eup %677  ;;  %v484_v40 = vsel %vm483_vm2, %v481_v37, 0.0 }
 0x104   :  { %v480_v17 = vmul.f32 0.6931472, %v678_v38 }
 0x106   :  { %v482_v30 = vsub.f32 %v474_v39, %v480_v17 }
 0x108   :  { %v486_v41 = vsel %vm485_vm3, %v482_v30, 0.0 }
 0x109   :  { %v487_v42 = vadd.f32 %v486_v41, %v484_v40 }
 0x10b   :  { %488 = vadd.xlane.f32.xlu0 %v487_v42 }
 0x182   :  { %v510_v43 = vpop.xlane.xlu1 %509 }
 0x183   :  { %v511_v44 = vrot.slane %v510_v43, 4 }
 0x185   :  { %v512_v45 = vadd.f32 %v511_v44, %v510_v43 }
 0x187   :  { %v513_v46 = vrot.slane %v512_v45, 2 }
 0x189   :  { %v514_v50 = vadd.f32 %v513_v46, %v512_v45 }
 0x18b   :  { %v515_v52 = vrot.slane %v514_v50, 1 }
 0x18d   :  { %v516_v1 = vadd.f32 %v515_v52, %v514_v50 }
 0x194   :  { %v489_v47 = vpop.xlane.xlu0 %488 }
 0x195   :  { %v490_v48 = vrot.slane %v489_v47, 4 }
 0x197   :  { %v491_v49 = vadd.f32 %v490_v48, %v489_v47 }
 0x199   :  { %v492_v51 = vrot.slane %v491_v49, 2 }
 0x19b   :  { %v493_v0 = vadd.f32 %v492_v51, %v491_v49 }
 0x19d   :  { %v494_v53 = vrot.slane %v493_v0, 1 }
 0x19f   :  { %v495_v54 = vadd.f32 %v494_v53, %v493_v0 }
 0x1a1   :  { %549 = vpush %v495_v54 }
 0x1a2   :  { %551 = vpush %v516_v1 }
 0x1d2   :  { %s550_s1 = spop %549 }
 0x1d3   :  { %s497_s26 = smul.f32 -0.011904762, %s550_s1  ;;  %s552_s27 = spop %551 }
 0x1d4   :  { %s518_s28 = smul.f32 0.33333334, %s552_s27 }
 0x1d5   :  { %499 = sst [smem:[#allocation5]] %s497_s26 }
 0x1d6   :  { %528 = dma.smem_to_hbm %s725_s29, 16, %s952_s3, [#allocation4]  }
 0x1d7   :  { %520 = sst [smem:[#allocation6]] %s518_s28 }
 0x1d8   :  { %536 = dma.smem_to_hbm %s726_s5, 16, %s953_s4, [#allocation7]  }
 0x1d9   :  { %717 = dma.done.wait [#allocation4], 16  }
 0x1da   :  { %718 = vsyncadd [#allocation4], 4294967280 }
 0x1db   :  { %719 = dma.done.wait [#allocation7], 16  }
 0x1dc   :  { %720 = vsyncadd [#allocation7], 4294967280 }
 0x1dd   :  { %543 = sfence }
 0x1de   :  { %544 = vsyncpa [#allocation3], 1 }
 0x1df   :  { %545 = vsyncpa [#allocation4], 1 }
 0x1e0   :  { %546 = vsyncpa [#allocation7], 1 }

</bundles_post_ra>
